<compile_context>
chip_gen: v7x
topology: tpu7x:2x2x1
jax: 0.10.0
libtpu: 0.0.40
codegen_flags: <defaults>
</compile_context>

<pallas_src>
import functools

import jax
import jax.numpy as jnp
from jax.experimental import pallas as pl
from jax.experimental.pallas import tpu as pltpu

_LANES = 128
_SUBLANES = 8
_MAX_TILE_ROWS = 512  # 512*128*4B = 256 KiB per operand tile (double-buffered ~1.5 MiB)


def _linear_dynamics_kernel(t_ref, x_ref, v_ref, o_ref):
    # t_ref: (1,1) f32 in SMEM; x_ref/v_ref/o_ref: (TILE_ROWS, 128) f32 in VMEM.
    t = t_ref[0, 0]
    o_ref[...] = x_ref[...] + v_ref[...] * t


def linear_dynamics(x, v, time):
    """o = x + v * time, fused in one lane-dense Pallas kernel."""
    orig_shape = x.shape
    orig_dtype = x.dtype

    L = int(x.size)
    xf = x.reshape(-1).astype(jnp.float32)
    vf = v.reshape(-1).astype(jnp.float32)

    # Flatten to a [rows, 128] lane-dense slab, rows padded to a tile multiple.
    rows = max(1, -(-L // _LANES))
    tile_rows = min(_MAX_TILE_ROWS, max(_SUBLANES, rows))
    tile_rows = -(-tile_rows // _SUBLANES) * _SUBLANES          # multiple of 8 sublanes
    rows_padded = -(-rows // tile_rows) * tile_rows
    pad = rows_padded * _LANES - L
    if pad:
        xf = jnp.pad(xf, (0, pad))
        vf = jnp.pad(vf, (0, pad))
    x2 = xf.reshape(rows_padded, _LANES)
    v2 = vf.reshape(rows_padded, _LANES)

    t2 = jnp.asarray(time, jnp.float32).reshape(1, 1)

    grid = (rows_padded // tile_rows,)
    out = pl.pallas_call(
        _linear_dynamics_kernel,
        out_shape=jax.ShapeDtypeStruct((rows_padded, _LANES), jnp.float32),
        grid=grid,
        in_specs=[
            pl.BlockSpec(memory_space=pltpu.MemorySpace.SMEM),          # scalar time
            pl.BlockSpec((tile_rows, _LANES), lambda i: (i, 0)),        # x tile
            pl.BlockSpec((tile_rows, _LANES), lambda i: (i, 0)),        # v tile
        ],
        out_specs=pl.BlockSpec((tile_rows, _LANES), lambda i: (i, 0)),
        compiler_params=pltpu.CompilerParams(
            dimension_semantics=("parallel",)),                         # dual-TC on v7x
    )(t2, x2, v2)

    return out.reshape(-1)[:L].reshape(orig_shape).astype(orig_dtype)


# --------------------------------------------------------------------------
# Driver
# --------------------------------------------------------------------------

if __name__ == "__main__":
    # n_body_system shapes: positions / velocities are [N, 3] with N = batch * n_nodes.
    batch, n_nodes = 2, 5
    N = batch * n_nodes

    key = jax.random.PRNGKey(0)
    k_x, k_v = jax.random.split(key, 2)
    x = jax.random.normal(k_x, (N, 3), jnp.float32)
    v = 0.5 * jax.random.normal(k_v, (N, 3), jnp.float32)
    time = jnp.ones((1,), jnp.float32) * 0.7        # nn.Parameter(torch.ones(1) * 0.7)

    fwd = jax.jit(linear_dynamics)
    out = jax.block_until_ready(fwd(x, v, time))

    ref = x + v * 0.7
    assert out.shape == (N, 3), out.shape
    assert bool(jnp.all(jnp.isfinite(out)))
    assert bool(jnp.allclose(out, ref, atol=1e-6, rtol=1e-6)), "mismatch vs reference"
    print("KERNEL_OK")
</pallas_src>

<mosaic_0001>
module attributes {stable_mosaic.version = 11 : i64} {
  func.func @_linear_dynamics_kernel(%arg0: i32, %arg1: memref<1x1xf32, #tpu.memory_space<smem>>, %arg2: memref<8x128xf32, #tpu.memory_space<vmem>>, %arg3: memref<8x128xf32, #tpu.memory_space<vmem>>, %arg4: memref<8x128xf32, #tpu.memory_space<vmem>>) attributes {dimension_semantics = [#tpu.dimension_semantics<parallel>], iteration_bounds = array<i64: 1>, scalar_prefetch = 0 : i64, scratch_operands = 0 : i64, tpu.core_type = #tpu.core_type<tc>, window_params = [{transform_indices = @transform_0, window_bounds = array<i64: 1, 1>}, {transform_indices = @transform_1, window_bounds = array<i64: 8, 128>}, {transform_indices = @transform_2, window_bounds = array<i64: 8, 128>}, {transform_indices = @transform_3, window_bounds = array<i64: 8, 128>}]} {
    %c0 = arith.constant 0 : index
    %c0_0 = arith.constant 0 : index
    %0 = memref.load %arg1[%c0, %c0_0] : memref<1x1xf32, #tpu.memory_space<smem>>
    %c0_1 = arith.constant 0 : index
    %c0_2 = arith.constant 0 : index
    %1 = vector.load %arg2[%c0_1, %c0_2] : memref<8x128xf32, #tpu.memory_space<vmem>>, vector<8x128xf32>
    %c0_3 = arith.constant 0 : index
    %c0_4 = arith.constant 0 : index
    %2 = vector.load %arg3[%c0_3, %c0_4] : memref<8x128xf32, #tpu.memory_space<vmem>>, vector<8x128xf32>
    %3 = vector.broadcast %0 : f32 to vector<8x128xf32>
    %4 = arith.mulf %2, %3 : vector<8x128xf32>
    %5 = arith.addf %1, %4 : vector<8x128xf32>
    %c0_5 = arith.constant 0 : index
    %c0_6 = arith.constant 0 : index
    %6 = vector.load %arg4[%c0_5, %c0_6] : memref<8x128xf32, #tpu.memory_space<vmem>>, vector<8x128xf32>
    tpu.vector_store %arg4[%c0_5, %c0_6], %5 {strides = array<i32>} : memref<8x128xf32, #tpu.memory_space<vmem>>, vector<8x128xf32>,
    return
  }
  func.func @transform_0(%arg0: i32) -> (i32, i32) {
    %c0_i32 = arith.constant 0 : i32
    %c0_i32_0 = arith.constant 0 : i32
    %c0_i32_1 = arith.constant 0 : i32
    return %c0_i32, %c0_i32_0 : i32, i32
  }
  func.func @transform_1(%arg0: i32) -> (i32, i32) {
    %c0_i32 = arith.constant 0 : i32
    %c0_i32_0 = arith.constant 0 : i32
    return %arg0, %c0_i32 : i32, i32
  }
  func.func @transform_2(%arg0: i32) -> (i32, i32) {
    %c0_i32 = arith.constant 0 : i32
    %c0_i32_0 = arith.constant 0 : i32
    return %arg0, %c0_i32 : i32, i32
  }
  func.func @transform_3(%arg0: i32) -> (i32, i32) {
    %c0_i32 = arith.constant 0 : i32
    %c0_i32_0 = arith.constant 0 : i32
    return %arg0, %c0_i32 : i32, i32
  }
}

</mosaic_0001>

<bundles_post_ra>
// kernel: linear_dynamics.1
= control target key start
LH: loop header
LB: loop body
LE: loop exit
PB: predicated region body
PF: predicated region fallthrough
CT: control target
= control target key end

     0   :  { %s58_s0 = inlined_call_operand.<no memory space> [shape: f32[1,1], index: 0, kind: input, shape index: {}]   ;;  %s59_s1 = inlined_call_operand.vmem [shape: f32[8,128], index: 1, kind: input, shape index: {}]   ;;  %s60_s2 = inlined_call_operand.vmem [shape: f32[8,128], index: 2, kind: input, shape index: {}]   ;;  %s61_s3 = inlined_call_operand.vmem [shape: f32[8,128], index: 3, kind: output, shape index: {}]  }
   0x1   :  { %v16_v0 = vld [vmem:[%s59_s1] sm:$0xff]  ;;  %v18_v2 = vstv %s58_s0 }
   0x2   :  { %v17_v1 = vld [vmem:[%s60_s2] sm:$0xff] }
   0x3   :  { %v19_v3 = vmul.f32 %v18_v2, %v17_v1 }
   0x5   :  { %v20_v4 = vadd.f32 %v19_v3, %v16_v0 }
   0x7   :  { %21 = vst [vmem:[%s61_s3] sm:$0xff] %v20_v4 }

</bundles_post_ra>
